<compile_context>
chip_gen: v7x
topology: tpu7x:2x2x1
jax: 0.10.0
libtpu: 0.0.40
codegen_flags: <defaults>
</compile_context>

<pallas_src>
import functools

import jax
import jax.numpy as jnp
from jax.experimental import pallas as pl
from jax.experimental.pallas import tpu as pltpu


def _make_delta_kernel(scale: float):
    def kernel(a_ref, b_ref, o_ref):
        # a_ref: (1, tm, R) VMEM tile (resident across inner j loop)
        # b_ref: (1, R, tn) VMEM tile
        # o_ref: (1, tm, tn)
        a = a_ref[0] * scale                         # scale tm*R elems (cheap)
        acc = jnp.dot(a, b_ref[0],
                      preferred_element_type=jnp.float32)   # MXU, f32 acc
        o_ref[0] = acc.astype(o_ref.dtype)
    return kernel


@functools.partial(jax.jit, static_argnames=("scale", "out_dtype", "tm", "tn"))
def factorized_tensor_forward(a, b, scale, out_dtype=jnp.float32,
                              tm=1024, tn=1024):
    """Compute (delta_q, delta_k, delta_v) from stacked LoRA factors.

    a:     (3, H, R) float32
    b:     (3, R, H) float32
    scale: static Python float (alpha / rank)
    out_dtype: delta dtype (bf16 halves HBM writeback if consumer allows it)
    returns: tuple of three (H, H) arrays
    """
    three, H, R = a.shape
    assert three == 3 and b.shape == (3, R, H)

    # Clamp tiles to H; small H falls back to a single full-extent block
    # (satisfies the (8,128) rule via "equal to full array dim").
    tm = min(tm, H)
    tn = min(tn, H)

    grid = (3, pl.cdiv(H, tm), pl.cdiv(H, tn))      # j (output-N) innermost

    deltas = pl.pallas_call(
        _make_delta_kernel(float(scale)),
        out_shape=jax.ShapeDtypeStruct((3, H, H), out_dtype),
        grid_spec=pltpu.PrefetchScalarGridSpec(
            num_scalar_prefetch=0,
            grid=grid,
            in_specs=[
                # A tile invariant along j -> stays resident, no re-DMA.
                pl.BlockSpec((1, tm, R), lambda p, i, j: (p, i, 0)),
                # B tile is tiny (R * tn * 4 bytes), refetched per j.
                pl.BlockSpec((1, R, tn), lambda p, i, j: (p, 0, j)),
            ],
            out_specs=pl.BlockSpec((1, tm, tn), lambda p, i, j: (p, i, j)),
        ),
        compiler_params=pltpu.CompilerParams(
            dimension_semantics=("parallel", "parallel", "parallel")),
    )(a, b)

    return deltas[0], deltas[1], deltas[2]


# TODO(synk): the registry/factory/multi-layer caching machinery of the
# abstract base class is host-side Python bookkeeping with no kernel
# equivalent; only the numerical forward (delta_q, delta_k, delta_v) is
# implemented here.


if __name__ == "__main__":
    hidden_size = 32
    rank = 8
    alpha = 16.0
    scale = alpha / rank

    key = jax.random.PRNGKey(0)
    ka, kb = jax.random.split(key)
    # Deterministic parameter init (LoRA convention: B = 0 would give a
    # trivially-zero delta, so give B a small nonzero init for testing).
    A = 0.02 * jax.random.normal(ka, (3, hidden_size, rank), dtype=jnp.float32)
    B = 0.02 * jax.random.normal(kb, (3, rank, hidden_size), dtype=jnp.float32)

    dq, dk, dv = factorized_tensor_forward(A, B, scale)
    jax.block_until_ready((dq, dk, dv))

    # Reference check in plain JAX.
    ref = scale * jnp.einsum("phr,prk->phk", A, B)
    assert dq.shape == (hidden_size, hidden_size)
    assert jnp.allclose(dq, ref[0], atol=1e-5)
    assert jnp.allclose(dk, ref[1], atol=1e-5)
    assert jnp.allclose(dv, ref[2], atol=1e-5)

    print("KERNEL_OK")
</pallas_src>

<mosaic_0001>
module attributes {stable_mosaic.version = 11 : i64} {
  func.func @kernel(%arg0: i32, %arg1: i32, %arg2: i32, %arg3: memref<1x32x8xf32, #tpu.memory_space<vmem>>, %arg4: memref<1x8x32xf32, #tpu.memory_space<vmem>>, %arg5: memref<1x32x32xf32, #tpu.memory_space<vmem>>) attributes {dimension_semantics = [#tpu.dimension_semantics<parallel>, #tpu.dimension_semantics<parallel>, #tpu.dimension_semantics<parallel>], iteration_bounds = array<i64: 3, 1, 1>, scalar_prefetch = 0 : i64, scratch_operands = 0 : i64, tpu.core_type = #tpu.core_type<tc>, window_params = [{transform_indices = @transform_0, window_bounds = array<i64: 1, 32, 8>}, {transform_indices = @transform_1, window_bounds = array<i64: 1, 8, 32>}, {transform_indices = @transform_2, window_bounds = array<i64: 1, 32, 32>}]} {
    %c0 = arith.constant 0 : index
    %c0_0 = arith.constant 0 : index
    %c0_1 = arith.constant 0 : index
    %0 = vector.load %arg3[%c0, %c0_0, %c0_1] : memref<1x32x8xf32, #tpu.memory_space<vmem>>, vector<1x32x8xf32>
    %1 = vector.shape_cast %0 : vector<1x32x8xf32> to vector<32x8xf32>
    %cst = arith.constant 2.000000e+00 : f32
    %2 = vector.broadcast %cst : f32 to vector<32x8xf32>
    %3 = arith.mulf %1, %2 : vector<32x8xf32>
    %c0_2 = arith.constant 0 : index
    %c0_3 = arith.constant 0 : index
    %c0_4 = arith.constant 0 : index
    %4 = vector.load %arg4[%c0_2, %c0_3, %c0_4] : memref<1x8x32xf32, #tpu.memory_space<vmem>>, vector<1x8x32xf32>
    %5 = vector.shape_cast %4 : vector<1x8x32xf32> to vector<8x32xf32>
    %cst_5 = arith.constant dense<0.000000e+00> : vector<32x32xf32>
    %6 = tpu.matmul %3, %5, %cst_5 {dimension_numbers = #tpu.dot_dimension_numbers<[1], [0], [0], [1], [0, 0, 1, 1], [], []>} : vector<32x8xf32>, vector<8x32xf32>, vector<32x32xf32> -> vector<32x32xf32>
    %c0_6 = arith.constant 0 : index
    %c0_7 = arith.constant 0 : index
    %c0_8 = arith.constant 0 : index
    %7 = vector.load %arg5[%c0_6, %c0_7, %c0_8] : memref<1x32x32xf32, #tpu.memory_space<vmem>>, vector<1x32x32xf32>
    %8 = vector.shape_cast %7 : vector<1x32x32xf32> to vector<32x32xf32>
    %9 = vector.shape_cast %6 : vector<32x32xf32> to vector<1x32x32xf32>
    tpu.vector_store %arg5[%c0_6, %c0_7, %c0_8], %9 {strides = array<i32>} : memref<1x32x32xf32, #tpu.memory_space<vmem>>, vector<1x32x32xf32>,
    return
  }
  func.func @transform_0(%arg0: i32, %arg1: i32, %arg2: i32) -> (i32, i32, i32) {
    %c0_i32 = arith.constant 0 : i32
    %c0_i32_0 = arith.constant 0 : i32
    return %arg0, %arg1, %c0_i32 : i32, i32, i32
  }
  func.func @transform_1(%arg0: i32, %arg1: i32, %arg2: i32) -> (i32, i32, i32) {
    %c0_i32 = arith.constant 0 : i32
    %c0_i32_0 = arith.constant 0 : i32
    return %arg0, %c0_i32, %arg2 : i32, i32, i32
  }
  func.func @transform_2(%arg0: i32, %arg1: i32, %arg2: i32) -> (i32, i32, i32) {
    %c0_i32 = arith.constant 0 : i32
    return %arg0, %arg1, %arg2 : i32, i32, i32
  }
}

</mosaic_0001>

<bundles_post_ra>
// kernel: factorized_tensor_forward.1
= control target key start
LH: loop header
LB: loop body
LE: loop exit
PB: predicated region body
PF: predicated region fallthrough
CT: control target
= control target key end

     0   :  { %s549_s9 = smov 0   ;;  %s551_s10 = smov 0   ;;  %s585_s0 = inlined_call_operand.vmem [shape: f32[3,32,8], index: 0, kind: input, shape index: {}]   ;;  %s586_s1 = inlined_call_operand.vmem [shape: f32[3,8,32], index: 1, kind: input, shape index: {}]   ;;  %s587_s2 = inlined_call_operand.vmem [shape: f32[3,32,32], index: 2, kind: output, shape index: {}]  }
   0x1   :  { %s553_s11 = smov 0  }
   0x2 LB: > { %s31_s12 = sadd.s32 1, %s528_s10  ;;  %p457_p0 = scmp.ge.s32.totalorder %s532_s11, 1  ;;  %s532_s11 = sphi %s553_s11, %s12_s11   ;;  %s528_s10 = sphi %s551_s10, %s589_s10   ;;  %s524_s9 = sphi %s549_s9, %s588_s9  }
   0x3   : > { %p33_p1 = scmp.ge.s32.totalorder %s31_s12, 3  ;;  %p156_p2 = scmp.lt.s32.totalorder %s532_s11, 4 }
   0x5   : > { %s591_s12 = smov (%p33_p1, %s31_s12), 0  ;;  %p157_p3 = pnand %p457_p0, %p156_p2 }
   0x6   : > { %p197_p4 = scmp.lt.s32.totalorder (!%p157_p3), %s524_s9, 2  ;;  %vm235_vm0 = vcmask (!%p157_p3), 64512   ;;  %vm333_vm1 = vcmask (!%p157_p3), 261120  }
   0x7   : > { %160 = sbr.rel (%p157_p3) target bundleno = 236 (0xec), region = 28 }
   0xe   : > { %s593_s9 = smov (!%p197_p4, %s524_s9), 2 }
   0xf   : > { %s460_s13 = sshll.u32 %s593_s9, 3  ;;  %s469_s14 = sshll.u32 %s593_s9, 5 }
  0x10   : > { %s212_s17 = scalar_lea.vmem %s586_s1, %s460_s13  ;;  %s204_s20 = scalar_lea.vmem %s585_s0, %s469_s14 }
  0x11   : > { %v234_v0 = vld [vmem:[%s212_s17] sm:$0xff]  ;;  %v228_v2 = vld [vmem:[%s204_s20 + $0x10] sm:$0xff]  ;;  %v227_v5 = vld [vmem:[%s204_s20 + $0x8] sm:$0xff]  ;;  %s224_s23 = scalar_lea.vmem %s587_s2, %s469_s14 }
  0x12   : > { %v226_v1 = vld [vmem:[%s204_s20] sm:$0xff]  ;;  %476 = vmatprep.subr.mxu0 %v234_v0  ;;  %484 = vmatprep.subr.mxu1 %v234_v0  ;;  %v232_v4 = vmul.f32 2.0, %v228_v2  ;;  %v229_v6 = vld [vmem:[%s204_s20 + $0x18] sm:$0xff]  ;;  %v231_v7 = vmul.f32 2.0, %v227_v5 }
  0x13   : > { %v230_v3 = vmul.f32 2.0, %v226_v1  ;;  %477 = vmatpush3.msra.mxu0 %v234_v0  ;;  %485 = vmatpush3.msra.mxu1 %v234_v0  ;;  %v233_v8 = vmul.f32 2.0, %v229_v6 }
  0x14   : > { %481 = vmatprep.mubr.msk.f32.mxu1 %vm235_vm0, %v232_v4 }
  0x15   : > { %478 = vmatprep.mubr.msk.f32.mxu0 %vm235_vm0, %v230_v3  ;;  %482 = vmatmul.mubr.msk.f32.vlgmr.msra.gmra.mrb[0].mxu1 %vm235_vm0, %v233_v8 }
  0x16   : > { %479 = vmatmul.mubr.msk.f32.vlgmr.msra.gmra.mrb[0].mxu0 %vm235_vm0, %v231_v7 }
  0xe8   : > { %v483_v10 = vpop.f32.mrb[0].mxu1 }
  0xe9   : > { %v480_v9 = vpop.f32.mrb[0].mxu0  ;;  %337 = vst.msk [vmem:[%s224_s23 + $0x18] sm:$0xff] %vm333_vm1, %v483_v10  ;;  %v324_v12 = vpop.f32.mrb[1].mxu1 }
  0xea   : > { %335 = vst.msk [vmem:[%s224_s23 + $0x8] sm:$0xff] %vm333_vm1, %v480_v9  ;;  %v314_v11 = vpop.f32.mrb[1].mxu0  ;;  %336 = vst.msk [vmem:[%s224_s23 + $0x10] sm:$0xff] %vm333_vm1, %v324_v12 }
  0xeb   : > { %334 = vst.msk [vmem:[%s224_s23] sm:$0xff] %vm333_vm1, %v314_v11 }
  0xec PF: > { %s12_s11 = sadd.s32 1, %s532_s11   ;;  %s588_s9 = smov %s528_s10 }
  0xed   : > { %p9_p5 = scmp.ge.s32.totalorder %s12_s11, 5   ;;  %s589_s10 = smov %s591_s12 }
  0xef   :  { %11 = sbr.rel (!%p9_p5) target bundleno = 2 (0x2), region = 61 }

</bundles_post_ra>
